<compile_context>
chip_gen: v7x
topology: tpu7x:2x2x1
jax: 0.10.0
libtpu: 0.0.40
codegen_flags: <defaults>
</compile_context>

<pallas_src>
import jax
import jax.numpy as jnp
from jax.experimental import pallas as pl
from jax.experimental.pallas import tpu as pltpu


def _reduce_linear_kernel(x_ref, w_ref, b_ref, o_ref):
    # x_ref : [TB, D]   input tile
    # w_ref : [F,  D]   weight in native nn.Linear layout (VMEM-resident)
    # b_ref : [1,  F]   bias (VMEM-resident)
    # o_ref : [TB, F]
    #
    # VPU + XLU formulation (avoids the MXU push-cadence bound for F=2):
    #   col_f = sum_d x[:, d] * W[f, d]   -> lane-broadcast mul (VPU) + lane
    #                                        reduction (XLU slot).
    x = x_ref[...]
    n_features = w_ref.shape[0]          # static (2)
    cols = []
    for f in range(n_features):
        w_row = w_ref[pl.ds(f, 1), :]                       # [1, D]
        cols.append(jnp.sum(x * w_row, axis=-1, keepdims=True))  # [TB, 1]
    out = jnp.concatenate(cols, axis=-1) + b_ref[...]        # [TB, F]
    o_ref[...] = out.astype(o_ref.dtype)


def _round_up(n, m):
    return ((n + m - 1) // m) * m


def reduce_module_forward(x, weight, bias, *, tile_b=None):
    """Pallas equivalent of ReduceModule.forward(x) == nn.Linear(D, 2)(x).

    x:      [B, D]
    weight: [F, D]   (PyTorch nn.Linear layout: [out_features, in_features])
    bias:   [F]
    returns [B, F]
    """
    B, D = x.shape
    out_features, d_w = weight.shape
    assert d_w == D, (weight.shape, x.shape)
    assert bias.shape == (out_features,)

    itemsize = jnp.dtype(x.dtype).itemsize
    # Sublane multiple for the second-to-last block dim: 8 for f32, 16 for bf16,
    # 32 for 1-byte dtypes.
    sublane = 8 * max(1, 4 // itemsize)

    # --- tile selection ------------------------------------------------------
    # Fixed ~512-row tiles (measured sweep: ~85% of HBM roofline), but never
    # larger than half the batch so the grid has >=2 "parallel" steps
    # (pipelining everywhere; dual-TensorCore sharding on v7x).
    if tile_b is None:
        half_b = _round_up(pl.cdiv(B, 2), sublane)
        tile_b = max(sublane, min(512, half_b))
    tile_b = max(sublane, _round_up(tile_b, sublane))

    grid = (pl.cdiv(B, tile_b),)   # ragged last block handled by Pallas masking

    b2 = bias.reshape(1, out_features)   # trivially cheap; folded under jit

    cost = pl.CostEstimate(
        flops=2 * B * D * out_features,
        transcendentals=0,
        bytes_accessed=(B * D + B * out_features
                        + out_features * D + out_features) * itemsize,
    )

    return pl.pallas_call(
        _reduce_linear_kernel,
        out_shape=jax.ShapeDtypeStruct((B, out_features), x.dtype),
        grid_spec=pl.GridSpec(
            grid=grid,
            in_specs=[
                pl.BlockSpec((tile_b, D), lambda i: (i, 0)),            # x tile
                pl.BlockSpec((out_features, D), lambda i: (0, 0)),      # W (resident)
                pl.BlockSpec((1, out_features), lambda i: (0, 0)),      # bias (resident)
            ],
            out_specs=pl.BlockSpec((tile_b, out_features), lambda i: (i, 0)),
        ),
        compiler_params=pltpu.CompilerParams(
            dimension_semantics=("parallel",),
        ),
        cost_estimate=cost,
    )(x, weight, b2)


if __name__ == "__main__":
    # Config consistent with the module's __init__:
    #   args.enc_hid_size = 32, args.field_emb_size = 16  ->  D = 48
    enc_hid_size = 32
    field_emb_size = 16
    D = enc_hid_size + field_emb_size
    out_features = 2

    key = jax.random.PRNGKey(0)
    kw, kb, kx1, kx2, kx3 = jax.random.split(key, 5)

    # Deterministic synthetic parameters (nn.Linear shapes).
    weight = jax.random.normal(kw, (out_features, D), dtype=jnp.float32) * 0.1
    bias = jax.random.normal(kb, (out_features,), dtype=jnp.float32) * 0.1

    # Case 1: tile-aligned tiny batch.
    B1 = 8
    x1 = jax.random.normal(kx1, (B1, D), dtype=jnp.float32)
    out1 = jax.block_until_ready(reduce_module_forward(x1, weight, bias))
    ref1 = x1 @ weight.T + bias
    assert out1.shape == (B1, out_features)
    assert jnp.allclose(out1, ref1, atol=1e-5, rtol=1e-5), "mismatch (aligned B)"

    # Case 2: ragged batch (exercises Pallas partial-block masking, no pad op).
    B2 = 13
    x2 = jax.random.normal(kx2, (B2, D), dtype=jnp.float32)
    out2 = jax.block_until_ready(reduce_module_forward(x2, weight, bias, tile_b=8))
    ref2 = x2 @ weight.T + bias
    assert out2.shape == (B2, out_features)
    assert jnp.allclose(out2, ref2, atol=1e-5, rtol=1e-5), "mismatch (ragged B)"

    # Case 3: default tile selection -> >=2 grid steps, ragged last block.
    B3 = 600
    x3 = jax.random.normal(kx3, (B3, D), dtype=jnp.float32)
    out3 = jax.block_until_ready(reduce_module_forward(x3, weight, bias))
    ref3 = x3 @ weight.T + bias
    assert out3.shape == (B3, out_features)
    assert jnp.allclose(out3, ref3, atol=1e-5, rtol=1e-5), "mismatch (default tile)"

    print("KERNEL_OK")
</pallas_src>

<mosaic_0001>
module attributes {stable_mosaic.version = 11 : i64} {
  func.func @_reduce_linear_kernel(%arg0: i32, %arg1: memref<8x48xf32, #tpu.memory_space<vmem>>, %arg2: memref<2x48xf32, #tpu.memory_space<vmem>>, %arg3: memref<1x2xf32, #tpu.memory_space<vmem>>, %arg4: memref<8x2xf32, #tpu.memory_space<vmem>>) attributes {dimension_semantics = [#tpu.dimension_semantics<parallel>], iteration_bounds = array<i64: 1>, scalar_prefetch = 0 : i64, scratch_operands = 0 : i64, tpu.core_type = #tpu.core_type<tc>, window_params = [{transform_indices = @transform_0, window_bounds = array<i64: 8, 48>}, {pipeline_mode = #tpu.pipeline_mode<synchronous>, transform_indices = @transform_1, window_bounds = array<i64: 2, 48>}, {pipeline_mode = #tpu.pipeline_mode<synchronous>, transform_indices = @transform_2, window_bounds = array<i64: 1, 2>}, {transform_indices = @transform_3, window_bounds = array<i64: 8, 2>}]} {
    %c0 = arith.constant 0 : index
    %c0_0 = arith.constant 0 : index
    %0 = vector.load %arg1[%c0, %c0_0] : memref<8x48xf32, #tpu.memory_space<vmem>>, vector<8x48xf32>
    %c0_1 = arith.constant 0 : index
    %c0_2 = arith.constant 0 : index
    %1 = vector.load %arg2[%c0_1, %c0_2] : memref<2x48xf32, #tpu.memory_space<vmem>>, vector<1x48xf32>
    %2 = vector.broadcast %1 : vector<1x48xf32> to vector<8x48xf32>
    %3 = arith.mulf %0, %2 : vector<8x48xf32>
    %cst = arith.constant dense<0.000000e+00> : vector<8xf32>
    %4 = vector.multi_reduction <add>, %3, %cst [1] : vector<8x48xf32> to vector<8xf32>
    %5 = vector.shape_cast %4 : vector<8xf32> to vector<8x1xf32>
    %c1 = arith.constant 1 : index
    %c0_3 = arith.constant 0 : index
    %6 = vector.load %arg2[%c1, %c0_3] : memref<2x48xf32, #tpu.memory_space<vmem>>, vector<1x48xf32>
    %7 = vector.broadcast %6 : vector<1x48xf32> to vector<8x48xf32>
    %8 = arith.mulf %0, %7 : vector<8x48xf32>
    %cst_4 = arith.constant dense<0.000000e+00> : vector<8xf32>
    %9 = vector.multi_reduction <add>, %8, %cst_4 [1] : vector<8x48xf32> to vector<8xf32>
    %10 = vector.shape_cast %9 : vector<8xf32> to vector<8x1xf32>
    %11 = tpu.concatenate %5, %10 in 1 : vector<8x1xf32>, vector<8x1xf32> -> vector<8x2xf32>
    %c0_5 = arith.constant 0 : index
    %c0_6 = arith.constant 0 : index
    %12 = vector.load %arg3[%c0_5, %c0_6] : memref<1x2xf32, #tpu.memory_space<vmem>>, vector<1x2xf32>
    %13 = vector.broadcast %12 : vector<1x2xf32> to vector<8x2xf32>
    %14 = arith.addf %11, %13 : vector<8x2xf32>
    %c0_7 = arith.constant 0 : index
    %c0_8 = arith.constant 0 : index
    %15 = vector.load %arg4[%c0_7, %c0_8] : memref<8x2xf32, #tpu.memory_space<vmem>>, vector<8x2xf32>
    tpu.vector_store %arg4[%c0_7, %c0_8], %14 {strides = array<i32>} : memref<8x2xf32, #tpu.memory_space<vmem>>, vector<8x2xf32>,
    return
  }
  func.func @transform_0(%arg0: i32) -> (i32, i32) {
    %c0_i32 = arith.constant 0 : i32
    %c0_i32_0 = arith.constant 0 : i32
    return %arg0, %c0_i32 : i32, i32
  }
  func.func @transform_1(%arg0: i32) -> (i32, i32) {
    %c0_i32 = arith.constant 0 : i32
    %c0_i32_0 = arith.constant 0 : i32
    %c0_i32_1 = arith.constant 0 : i32
    return %c0_i32, %c0_i32_0 : i32, i32
  }
  func.func @transform_2(%arg0: i32) -> (i32, i32) {
    %c0_i32 = arith.constant 0 : i32
    %c0_i32_0 = arith.constant 0 : i32
    %c0_i32_1 = arith.constant 0 : i32
    return %c0_i32, %c0_i32_0 : i32, i32
  }
  func.func @transform_3(%arg0: i32) -> (i32, i32) {
    %c0_i32 = arith.constant 0 : i32
    %c0_i32_0 = arith.constant 0 : i32
    return %arg0, %c0_i32 : i32, i32
  }
}

</mosaic_0001>

<bundles_post_ra>
// kernel: tpu_custom_call.1
= control target key start
LH: loop header
LB: loop body
LE: loop exit
PB: predicated region body
PF: predicated region fallthrough
CT: control target
= control target key end

     0   :  { %8 = vsyncpa [#allocation3], 0  ;;  %s91_s12 = smov [#allocation2]   ;;  %s136_s0 = inlined_call_operand.hbm [shape: f32[8,48], index: 0, kind: input, shape index: {}]   ;;  %s137_s1 = inlined_call_operand.vmem [shape: f32[2,48], index: 1, kind: input, shape index: {}]   ;;  %s138_s2 = inlined_call_operand.vmem [shape: f32[1,2], index: 2, kind: input, shape index: {}]   ;;  %s139_s3 = inlined_call_operand.vmem [shape: f32[8,2], index: 3, kind: output, shape index: {}]  }
   0x1   :  { %s15_s13 = sshll.u32 %s91_s12, 4  ;;  %s67_s16 = scalar_lea.hbm %s136_s0, 128  ;;  %s16_s13 = int_to_ptr.vmem [resolvable:$true] %s15_s13 }
   0x2   :  { %p68_p0 = scmp.ne.s32.totalorder %s136_s0, %s67_s16  ;;  %p71_p1 = scmp.lt.u32.totalorder %s67_s16, %s136_s0 }
   0x4   :  { %p73_p2 = pnand %p71_p1, %p68_p0 }
   0x6   :  { %76 = shalt.err (!%p73_p2)
}
   0x7   :  { %s77_s21 = scalar_lea.vmem %s16_s13, 128  ;;  %p82_p4 = scmp.lt.s32.totalorder %s16_s13, %s16_s13 }
   0x8   :  { %p78_p3 = scmp.ne.s32.totalorder %s16_s13, %s77_s21  ;;  %p83_p5 = scmp.lt.s32.totalorder %s77_s21, %s77_s21 }
   0xa   :  { %p84_p6 = por %p83_p5, %p82_p4 }
   0xc   :  { %p85_p7 = pnand %p84_p6, %p78_p3 }
   0xe   :  { %88 = shalt.err (!%p85_p7)
}
   0xf   :  { %18 = dma.hbm_to_vmem [thread:$0]  %s136_s0, 128, %s16_s13, [#allocation3]  }
  0x10   :  { %89 = dma.done.wait [#allocation3], 128  }
  0x11   :  { %90 = vsyncadd [#allocation3], 4294967168  ;;  %v26_v0 = vld [vmem:[#allocation2] sm:$0xff]  ;;  %v63_v1 = vld [vmem:[%s137_s1] ss:$0 sm:$0xff]  ;;  %vm33_vm0 = vcmask 392192  }
  0x12   :  { %v64_v2 = vld [vmem:[%s137_s1 + $0x1] ss:$0 sm:$0xff]  ;;  %v32_v3 = vmul.f32 %v63_v1, %v26_v0  ;;  %vm46_vm1 = vcmask 7168   ;;  %v65_v8 = vld [vmem:[%s138_s2] ss:$0 sm:$0xff]  ;;  %vm56_vm2 = vcmask 15360  }
  0x13   :  { %v42_v4 = vmul.f32 %v64_v2, %v26_v0 }
  0x14   :  { %v34_v5 = vsel %vm33_vm0, %v32_v3, 0.0 }
  0x15   :  { %35 = vadd.xlane.f32.xlu0 %v34_v5  ;;  %v43_v6 = vsel %vm33_vm0, %v42_v4, 0.0 }
  0x19   :  { %44 = vadd.xlane.f32.xlu0 %v43_v6 }
  0xa2   :  { %v36_v7 = vpop.xlane.xlu0 %35 }
  0xa6   :  { %v45_v9 = vpop.xlane.xlu0 %44 }
  0xa7   :  { %v47_v10 = vsel %vm46_vm1, %v36_v7, %v45_v9 }
  0xa8   :  { %v55_v11 = vadd.f32 %v65_v8, %v47_v10 }
  0xaa   :  { %57 = vst.msk [vmem:[%s139_s3] sm:$0xff] %vm56_vm2, %v55_v11 }
  0xab   :  { %62 = vsyncpa [#allocation3], 1 }

</bundles_post_ra>
